<compile_context>
chip_gen: v7x
topology: tpu7x:2x2x1
jax: 0.10.0
libtpu: 0.0.40
codegen_flags: <defaults>
</compile_context>

<pallas_src>
import functools
import math

import jax
import jax.numpy as jnp
from jax import lax
from jax.experimental import pallas as pl
from jax.experimental.pallas import tpu as pltpu


def _round_up(x, m):
    return (x + m - 1) // m * m


def _tpu_vmem_capacity_bytes(default=64 << 20):
    """Per-core VMEM capacity; conservative default (v7x: 64 MiB) if the
    query is unavailable."""
    try:
        return int(pltpu.get_tpu_info().vmem_capacity_bytes)
    except Exception:
        return default


# --------------------------------------------------------------------------
# Kernels
# --------------------------------------------------------------------------

def _deep_linear_resident_kernel(*refs, nh):
    """All weights VMEM-resident; one grid step per batch tile runs every
    layer.  Activation stays f32; only MXU inputs are cast to bf16."""
    if nh > 0:
        x_ref, w0_ref, b0_ref, wh_ref, bh_ref, wo_ref, bo_ref, o_ref = refs
    else:
        x_ref, w0_ref, b0_ref, wo_ref, bo_ref, o_ref = refs
        wh_ref = bh_ref = None

    # layer 0: (input_dim -> H); scale already folded into w0/b0.
    acc = jnp.dot(x_ref[...], w0_ref[...],
                  preferred_element_type=jnp.float32) + b0_ref[...]

    # hidden layers 1..L-1 over the resident (nh, H, H) weight stack.
    if nh > 0:
        if nh <= 8:
            for l in range(nh):          # static unroll for small L
                acc = jnp.dot(acc.astype(jnp.bfloat16), wh_ref[l],
                              preferred_element_type=jnp.float32) + bh_ref[l]
        else:
            def body(l, a):
                return (jnp.dot(a.astype(jnp.bfloat16), wh_ref[l],
                                preferred_element_type=jnp.float32)
                        + bh_ref[l])
            acc = lax.fori_loop(0, nh, body, acc)

    # output layer; lane-dense (128-padded) writeback.
    acc = jnp.dot(acc.astype(jnp.bfloat16), wo_ref[...],
                  preferred_element_type=jnp.float32) + bo_ref[...]
    o_ref[...] = acc.astype(o_ref.dtype)


def _deep_linear_streamed_kernel(x_ref, w0_ref, b0_ref, wh_ref, bh_ref,
                                 wo_ref, bo_ref, o_ref, h_ref):
    """Fallback: one streamed (H, H) hidden weight per layer grid step.
    h_ref is an f32 VMEM scratch persisting across the layer axis."""
    l = pl.program_id(1)
    last = pl.num_programs(1) - 1

    # step 0: first layer
    @pl.when(l == 0)
    def _():
        h_ref[...] = jnp.dot(x_ref[...], w0_ref[...],
                             preferred_element_type=jnp.float32) + b0_ref[...]

    # steps 1 .. L-1: one hidden layer per step (wh/bh are the streamed block)
    @pl.when(jnp.logical_and(l > 0, l < last))
    def _():
        h_ref[...] = (jnp.dot(h_ref[...].astype(jnp.bfloat16), wh_ref[...],
                              preferred_element_type=jnp.float32)
                      + bh_ref[...])

    # step L: output layer
    @pl.when(l == last)
    def _():
        acc = jnp.dot(h_ref[...].astype(jnp.bfloat16), wo_ref[...],
                      preferred_element_type=jnp.float32) + bo_ref[...]
        o_ref[...] = acc.astype(o_ref.dtype)


# --------------------------------------------------------------------------
# Parameter prep / wrapper
# --------------------------------------------------------------------------

def prepare_params(params, *, input_dim, hidden_dim, L, n_classes,
                   compute_dtype=jnp.bfloat16):
    """One-time prep: fold per-layer scales into weights/biases, pad feature
    dims to multiples of 128 lanes, cast matmul operands to bf16 (biases f32)."""
    din_p = _round_up(input_dim, 128)
    h_p = _round_up(hidden_dim, 128)
    c_p = _round_up(n_classes, 128)

    s0 = 1.0 / math.sqrt(float(input_dim))
    sh = 1.0 / math.sqrt(float(hidden_dim))
    so = 1.0 / float(hidden_dim)

    def pad2(a, rows, cols):
        return jnp.pad(a, ((0, rows - a.shape[0]), (0, cols - a.shape[1])))

    prepared = {
        "w0": pad2(params["w0"] * s0, din_p, h_p).astype(compute_dtype),
        "b0": pad2(params["b0"] * s0, 1, h_p).astype(jnp.float32),
        "wo": pad2(params["wo"] * so, h_p, c_p).astype(compute_dtype),
        "bo": pad2(params["bo"] * so, 1, c_p).astype(jnp.float32),
    }
    if L > 1:
        wh = jnp.pad(params["wh"] * sh,
                     ((0, 0), (0, h_p - hidden_dim), (0, h_p - hidden_dim)))
        bh = jnp.pad(params["bh"] * sh,
                     ((0, 0), (0, 0), (0, h_p - hidden_dim)))
        prepared["wh"] = wh.astype(compute_dtype)
        prepared["bh"] = bh.astype(jnp.float32)
    return prepared


def deep_linear_forward(x, prepared, *, input_dim, hidden_dim, L, n_classes):
    """x: (B, ...) with prod(...) == input_dim (e.g. NCHW image)."""
    B = x.shape[0]
    x2d = x.reshape(B, -1)
    assert x2d.shape[1] == input_dim

    din_p, h_p = prepared["w0"].shape
    c_p = prepared["wo"].shape[1]
    nh = L - 1

    # ---- VMEM budget (per core), valid for v5e/v6e (128 MiB) and v7x (64 MiB)
    vmem_cap = _tpu_vmem_capacity_bytes()
    vmem_budget = int(0.85 * vmem_cap)
    headroom = 2 << 20

    # conservative accounting: assume 2 buffers for every BlockSpec operand
    w0_bytes = 2 * (din_p * h_p * 2 + h_p * 4)
    wo_bytes = 2 * (h_p * c_p * 2 + c_p * 4)
    wh_all_bytes = 2 * nh * (h_p * h_p * 2 + h_p * 4) if nh > 0 else 0
    wh_one_bytes = 2 * (h_p * h_p * 2 + h_p * 4) if nh > 0 else 0

    def variable_bytes(tm):
        b = 2 * tm * din_p * 2       # x block (bf16), double-buffered
        b += 2 * tm * c_p * 4        # output block (f32), double-buffered
        b += tm * h_p * 4            # f32 running activation
        b += tm * h_p * 2            # bf16 MXU-input temp
        return b

    def fits_resident(tm):
        return (w0_bytes + wo_bytes + wh_all_bytes + variable_bytes(tm)
                + headroom) <= vmem_budget

    def fits_streamed(tm):
        return (w0_bytes + wo_bytes + wh_one_bytes + variable_bytes(tm)
                + headroom) <= vmem_budget

    use_resident = fits_resident(16)

    # ---- batch tile size
    tm = min(512, _round_up(max(B, 1), 16))
    if B >= 32:
        # keep >= 2 batch tiles so the "parallel" batch axis can feed both
        # TensorCores on a megacore part (v7x)
        tm = min(tm, _round_up((B + 1) // 2, 16))
    fits = fits_resident if use_resident else fits_streamed
    while tm > 16 and not fits(tm):
        tm = max(16, _round_up(tm // 2, 16))

    b_p = _round_up(B, tm)
    nb = b_p // tm

    xp = jnp.pad(x2d.astype(jnp.bfloat16),
                 ((0, b_p - B), (0, din_p - input_dim)))

    flops = 2 * b_p * (din_p * h_p + nh * h_p * h_p + h_p * c_p)
    out_bytes = b_p * c_p * 4

    if use_resident:
        # ------------------------------------------------------------------
        # Fast path: grid = (batch_tiles,), every weight VMEM-resident,
        # all L+1 layers fused into a single grid step.
        # ------------------------------------------------------------------
        const2 = lambda b: (0, 0)
        const3 = lambda b: (0, 0, 0)
        batch_map = lambda b: (b, 0)

        in_specs = [pl.BlockSpec((tm, din_p), batch_map),   # x (bf16)
                    pl.BlockSpec((din_p, h_p), const2),     # w0
                    pl.BlockSpec((1, h_p), const2)]         # b0
        operands = [xp, prepared["w0"], prepared["b0"]]
        if nh > 0:
            in_specs += [pl.BlockSpec((nh, h_p, h_p), const3),  # wh (resident)
                         pl.BlockSpec((nh, 1, h_p), const3)]    # bh
            operands += [prepared["wh"], prepared["bh"]]
        in_specs += [pl.BlockSpec((h_p, c_p), const2),      # wo
                     pl.BlockSpec((1, c_p), const2)]        # bo
        operands += [prepared["wo"], prepared["bo"]]

        bytes_accessed = sum(int(v.nbytes) for v in operands) + out_bytes
        needed = (w0_bytes + wo_bytes + wh_all_bytes + variable_bytes(tm)
                  + headroom)
        vmem_limit = int(min(vmem_budget, max(2 * needed, 16 << 20)))

        out = pl.pallas_call(
            functools.partial(_deep_linear_resident_kernel, nh=nh),
            out_shape=jax.ShapeDtypeStruct((b_p, c_p), jnp.float32),
            grid=(nb,),
            in_specs=in_specs,
            out_specs=pl.BlockSpec((tm, c_p), batch_map),
            compiler_params=pltpu.CompilerParams(
                dimension_semantics=("parallel",),
                vmem_limit_bytes=vmem_limit),
            cost_estimate=pl.CostEstimate(flops=flops, transcendentals=0,
                                          bytes_accessed=bytes_accessed),
        )(*operands)
    else:
        # ------------------------------------------------------------------
        # Fallback: layer-streaming grid for very large L*H.
        # ------------------------------------------------------------------
        nsteps = L + 1
        const2 = lambda b, l: (0, 0)
        batch_map = lambda b, l: (b, 0)

        def layer_map(b, l):
            # Only valid at steps 1..L-1; tied to the pl.when structure in
            # _deep_linear_streamed_kernel (wh/bh are never read at l==0 or
            # l==last).  The clamp reuses an already-resident block at the
            # boundary steps instead of issuing an out-of-bounds / extra DMA.
            return (jnp.minimum(jnp.maximum(l - 1, 0), nh - 1), 0, 0)

        in_specs = [
            pl.BlockSpec((tm, din_p), batch_map),                 # x (bf16)
            pl.BlockSpec((din_p, h_p), const2),                   # w0
            pl.BlockSpec((1, h_p), const2),                       # b0
            pl.BlockSpec((pl.Squeezed(), h_p, h_p), layer_map),   # wh (streamed)
            pl.BlockSpec((pl.Squeezed(), 1, h_p), layer_map),     # bh
            pl.BlockSpec((h_p, c_p), const2),                     # wo
            pl.BlockSpec((1, c_p), const2),                       # bo
        ]
        # TODO(synk): sweep pipeline_mode=pl.Buffered(3) on the wh spec for
        # very large H once the per-step matmul no longer hides the DMA.
        operands = [xp, prepared["w0"], prepared["b0"],
                    prepared["wh"], prepared["bh"],
                    prepared["wo"], prepared["bo"]]

        bytes_accessed = (int(xp.nbytes)
                          + int(prepared["w0"].nbytes)
                          + int(prepared["b0"].nbytes)
                          + nb * (int(prepared["wh"].nbytes)
                                  + int(prepared["bh"].nbytes))
                          + int(prepared["wo"].nbytes)
                          + int(prepared["bo"].nbytes)
                          + out_bytes)
        needed = (w0_bytes + wo_bytes + wh_one_bytes + variable_bytes(tm)
                  + headroom)
        vmem_limit = int(min(vmem_budget, max(2 * needed, 16 << 20)))

        out = pl.pallas_call(
            _deep_linear_streamed_kernel,
            out_shape=jax.ShapeDtypeStruct((b_p, c_p), jnp.float32),
            grid=(nb, nsteps),
            in_specs=in_specs,
            out_specs=pl.BlockSpec((tm, c_p), batch_map),
            scratch_shapes=[pltpu.VMEM((tm, h_p), jnp.float32)],
            compiler_params=pltpu.CompilerParams(
                dimension_semantics=("parallel", "arbitrary"),
                vmem_limit_bytes=vmem_limit),
            cost_estimate=pl.CostEstimate(flops=flops, transcendentals=0,
                                          bytes_accessed=bytes_accessed),
        )(*operands)

    return out[:B, :n_classes]


# --------------------------------------------------------------------------
# Init / reference / demo
# --------------------------------------------------------------------------

def init_params(key, input_dim, hidden_dim, L, n_classes):
    """Deterministic synthetic init (PyTorch-style uniform bounds), raw f32.
    Linear weights are stored transposed: w0 = W0^T, wh[l] = Wl^T, wo = Wout^T."""
    ks = jax.random.split(key, 6)

    def uni(k, shape, fan_in):
        bound = 1.0 / math.sqrt(fan_in)
        return jax.random.uniform(k, shape, jnp.float32, -bound, bound)

    params = {
        "w0": uni(ks[0], (input_dim, hidden_dim), input_dim),
        "b0": uni(ks[1], (1, hidden_dim), input_dim),
        "wo": uni(ks[4], (hidden_dim, n_classes), hidden_dim),
        "bo": uni(ks[5], (1, n_classes), hidden_dim),
    }
    if L > 1:
        params["wh"] = uni(ks[2], (L - 1, hidden_dim, hidden_dim), hidden_dim)
        params["bh"] = uni(ks[3], (L - 1, 1, hidden_dim), hidden_dim)
    return params


def reference_forward(x, params, *, input_dim, hidden_dim, L, n_classes):
    """Pure-JAX f32 reference matching the PyTorch forward exactly."""
    B = x.shape[0]
    h = x.reshape(B, -1).astype(jnp.float32)
    h = (h @ params["w0"] + params["b0"]) / math.sqrt(float(input_dim))
    for l in range(L - 1):
        h = (h @ params["wh"][l] + params["bh"][l]) / math.sqrt(float(hidden_dim))
    return (h @ params["wo"] + params["bo"]) / float(hidden_dim)


if __name__ == "__main__":
    B, C, Hh, Ww = 2, 4, 16, 16
    input_dim = C * Hh * Ww          # 1024, from x.view(B, -1)
    hidden_dim = 32
    L = 3
    n_classes = 8

    key = jax.random.PRNGKey(0)
    kx, kp = jax.random.split(key)
    x = jax.random.normal(kx, (B, C, Hh, Ww), jnp.float32)   # NCHW like PyTorch
    params = init_params(kp, input_dim, hidden_dim, L, n_classes)
    prepared = prepare_params(params, input_dim=input_dim, hidden_dim=hidden_dim,
                              L=L, n_classes=n_classes)

    out = deep_linear_forward(x, prepared, input_dim=input_dim,
                              hidden_dim=hidden_dim, L=L, n_classes=n_classes)
    out = jax.block_until_ready(out)

    ref = reference_forward(x, params, input_dim=input_dim,
                            hidden_dim=hidden_dim, L=L, n_classes=n_classes)
    assert out.shape == (B, n_classes)
    # bf16 MXU operands (f32 activations/accumulation) => bf16-level tolerance.
    err = float(jnp.max(jnp.abs(out - ref)))
    scale = float(jnp.max(jnp.abs(ref))) + 1e-12
    assert err <= 5e-2 * scale, f"mismatch vs reference: err={err}, ref_max={scale}"
    print("KERNEL_OK")
</pallas_src>

<mosaic_0001>
module attributes {stable_mosaic.version = 11 : i64} {
  func.func @_deep_linear_resident_kernel(%arg0: i32, %arg1: memref<16x1024xbf16, #tpu.memory_space<vmem>>, %arg2: memref<1024x128xbf16, #tpu.memory_space<vmem>>, %arg3: memref<1x128xf32, #tpu.memory_space<vmem>>, %arg4: memref<2x128x128xbf16, #tpu.memory_space<vmem>>, %arg5: memref<2x1x128xf32, #tpu.memory_space<vmem>>, %arg6: memref<128x128xbf16, #tpu.memory_space<vmem>>, %arg7: memref<1x128xf32, #tpu.memory_space<vmem>>, %arg8: memref<16x128xf32, #tpu.memory_space<vmem>>) attributes {dimension_semantics = [#tpu.dimension_semantics<parallel>], iteration_bounds = array<i64: 1>, scalar_prefetch = 0 : i64, scratch_operands = 0 : i64, tpu.core_type = #tpu.core_type<tc>, window_params = [{transform_indices = @transform_0, window_bounds = array<i64: 16, 1024>}, {pipeline_mode = #tpu.pipeline_mode<synchronous>, transform_indices = @transform_1, window_bounds = array<i64: 1024, 128>}, {pipeline_mode = #tpu.pipeline_mode<synchronous>, transform_indices = @transform_2, window_bounds = array<i64: 1, 128>}, {pipeline_mode = #tpu.pipeline_mode<synchronous>, transform_indices = @transform_3, window_bounds = array<i64: 2, 128, 128>}, {pipeline_mode = #tpu.pipeline_mode<synchronous>, transform_indices = @transform_4, window_bounds = array<i64: 2, 1, 128>}, {pipeline_mode = #tpu.pipeline_mode<synchronous>, transform_indices = @transform_5, window_bounds = array<i64: 128, 128>}, {pipeline_mode = #tpu.pipeline_mode<synchronous>, transform_indices = @transform_6, window_bounds = array<i64: 1, 128>}, {transform_indices = @transform_7, window_bounds = array<i64: 16, 128>}]} {
    %c0 = arith.constant 0 : index
    %c0_0 = arith.constant 0 : index
    %0 = vector.load %arg1[%c0, %c0_0] : memref<16x1024xbf16, #tpu.memory_space<vmem>>, vector<16x1024xbf16>
    %c0_1 = arith.constant 0 : index
    %c0_2 = arith.constant 0 : index
    %1 = vector.load %arg2[%c0_1, %c0_2] : memref<1024x128xbf16, #tpu.memory_space<vmem>>, vector<1024x128xbf16>
    %cst = arith.constant dense<0.000000e+00> : vector<16x128xf32>
    %2 = tpu.matmul %0, %1, %cst {dimension_numbers = #tpu.dot_dimension_numbers<[1], [0], [0], [1], [0, 0, 1, 1], [], []>} : vector<16x1024xbf16>, vector<1024x128xbf16>, vector<16x128xf32> -> vector<16x128xf32>
    %c0_3 = arith.constant 0 : index
    %c0_4 = arith.constant 0 : index
    %3 = vector.load %arg3[%c0_3, %c0_4] : memref<1x128xf32, #tpu.memory_space<vmem>>, vector<1x128xf32>
    %4 = vector.broadcast %3 : vector<1x128xf32> to vector<16x128xf32>
    %5 = arith.addf %2, %4 : vector<16x128xf32>
    %6 = arith.truncf %5 : vector<16x128xf32> to vector<16x128xbf16>
    %c0_5 = arith.constant 0 : index
    %c0_6 = arith.constant 0 : index
    %c0_7 = arith.constant 0 : index
    %7 = vector.load %arg4[%c0_5, %c0_6, %c0_7] : memref<2x128x128xbf16, #tpu.memory_space<vmem>>, vector<1x128x128xbf16>
    %8 = vector.shape_cast %7 : vector<1x128x128xbf16> to vector<128x128xbf16>
    %cst_8 = arith.constant dense<0.000000e+00> : vector<16x128xf32>
    %9 = tpu.matmul %6, %8, %cst_8 {dimension_numbers = #tpu.dot_dimension_numbers<[1], [0], [0], [1], [0, 0, 1, 1], [], []>} : vector<16x128xbf16>, vector<128x128xbf16>, vector<16x128xf32> -> vector<16x128xf32>
    %c0_9 = arith.constant 0 : index
    %c0_10 = arith.constant 0 : index
    %c0_11 = arith.constant 0 : index
    %10 = vector.load %arg5[%c0_9, %c0_10, %c0_11] : memref<2x1x128xf32, #tpu.memory_space<vmem>>, vector<1x1x128xf32>
    %11 = vector.shape_cast %10 : vector<1x1x128xf32> to vector<1x128xf32>
    %12 = vector.broadcast %11 : vector<1x128xf32> to vector<16x128xf32>
    %13 = arith.addf %9, %12 : vector<16x128xf32>
    %14 = arith.truncf %13 : vector<16x128xf32> to vector<16x128xbf16>
    %c1 = arith.constant 1 : index
    %c0_12 = arith.constant 0 : index
    %c0_13 = arith.constant 0 : index
    %15 = vector.load %arg4[%c1, %c0_12, %c0_13] : memref<2x128x128xbf16, #tpu.memory_space<vmem>>, vector<1x128x128xbf16>
    %16 = vector.shape_cast %15 : vector<1x128x128xbf16> to vector<128x128xbf16>
    %cst_14 = arith.constant dense<0.000000e+00> : vector<16x128xf32>
    %17 = tpu.matmul %14, %16, %cst_14 {dimension_numbers = #tpu.dot_dimension_numbers<[1], [0], [0], [1], [0, 0, 1, 1], [], []>} : vector<16x128xbf16>, vector<128x128xbf16>, vector<16x128xf32> -> vector<16x128xf32>
    %c1_15 = arith.constant 1 : index
    %c0_16 = arith.constant 0 : index
    %c0_17 = arith.constant 0 : index
    %18 = vector.load %arg5[%c1_15, %c0_16, %c0_17] : memref<2x1x128xf32, #tpu.memory_space<vmem>>, vector<1x1x128xf32>
    %19 = vector.shape_cast %18 : vector<1x1x128xf32> to vector<1x128xf32>
    %20 = vector.broadcast %19 : vector<1x128xf32> to vector<16x128xf32>
    %21 = arith.addf %17, %20 : vector<16x128xf32>
    %22 = arith.truncf %21 : vector<16x128xf32> to vector<16x128xbf16>
    %c0_18 = arith.constant 0 : index
    %c0_19 = arith.constant 0 : index
    %23 = vector.load %arg6[%c0_18, %c0_19] : memref<128x128xbf16, #tpu.memory_space<vmem>>, vector<128x128xbf16>
    %cst_20 = arith.constant dense<0.000000e+00> : vector<16x128xf32>
    %24 = tpu.matmul %22, %23, %cst_20 {dimension_numbers = #tpu.dot_dimension_numbers<[1], [0], [0], [1], [0, 0, 1, 1], [], []>} : vector<16x128xbf16>, vector<128x128xbf16>, vector<16x128xf32> -> vector<16x128xf32>
    %c0_21 = arith.constant 0 : index
    %c0_22 = arith.constant 0 : index
    %25 = vector.load %arg7[%c0_21, %c0_22] : memref<1x128xf32, #tpu.memory_space<vmem>>, vector<1x128xf32>
    %26 = vector.broadcast %25 : vector<1x128xf32> to vector<16x128xf32>
    %27 = arith.addf %24, %26 : vector<16x128xf32>
    %c0_23 = arith.constant 0 : index
    %c0_24 = arith.constant 0 : index
    %28 = vector.load %arg8[%c0_23, %c0_24] : memref<16x128xf32, #tpu.memory_space<vmem>>, vector<16x128xf32>
    tpu.vector_store %arg8[%c0_23, %c0_24], %27 {strides = array<i32>} : memref<16x128xf32, #tpu.memory_space<vmem>>, vector<16x128xf32>,
    return
  }
  func.func @transform_0(%arg0: i32) -> (i32, i32) {
    %c0_i32 = arith.constant 0 : i32
    %c0_i32_0 = arith.constant 0 : i32
    return %arg0, %c0_i32 : i32, i32
  }
  func.func @transform_1(%arg0: i32) -> (i32, i32) {
    %c0_i32 = arith.constant 0 : i32
    %c0_i32_0 = arith.constant 0 : i32
    %c0_i32_1 = arith.constant 0 : i32
    return %c0_i32, %c0_i32_0 : i32, i32
  }
  func.func @transform_2(%arg0: i32) -> (i32, i32) {
    %c0_i32 = arith.constant 0 : i32
    %c0_i32_0 = arith.constant 0 : i32
    %c0_i32_1 = arith.constant 0 : i32
    return %c0_i32, %c0_i32_0 : i32, i32
  }
  func.func @transform_3(%arg0: i32) -> (i32, i32, i32) {
    %c0_i32 = arith.constant 0 : i32
    %c0_i32_0 = arith.constant 0 : i32
    %c0_i32_1 = arith.constant 0 : i32
    %c0_i32_2 = arith.constant 0 : i32
    return %c0_i32, %c0_i32_0, %c0_i32_1 : i32, i32, i32
  }
  func.func @transform_4(%arg0: i32) -> (i32, i32, i32) {
    %c0_i32 = arith.constant 0 : i32
    %c0_i32_0 = arith.constant 0 : i32
    %c0_i32_1 = arith.constant 0 : i32
    %c0_i32_2 = arith.constant 0 : i32
    return %c0_i32, %c0_i32_0, %c0_i32_1 : i32, i32, i32
  }
  func.func @transform_5(%arg0: i32) -> (i32, i32) {
    %c0_i32 = arith.constant 0 : i32
    %c0_i32_0 = arith.constant 0 : i32
    %c0_i32_1 = arith.constant 0 : i32
    return %c0_i32, %c0_i32_0 : i32, i32
  }
  func.func @transform_6(%arg0: i32) -> (i32, i32) {
    %c0_i32 = arith.constant 0 : i32
    %c0_i32_0 = arith.constant 0 : i32
    %c0_i32_1 = arith.constant 0 : i32
    return %c0_i32, %c0_i32_0 : i32, i32
  }
  func.func @transform_7(%arg0: i32) -> (i32, i32) {
    %c0_i32 = arith.constant 0 : i32
    %c0_i32_0 = arith.constant 0 : i32
    return %arg0, %c0_i32 : i32, i32
  }
}

</mosaic_0001>

<bundles_post_ra>
// kernel: tpu_custom_call.1
= control target key start
LH: loop header
LB: loop body
LE: loop exit
PB: predicated region body
PF: predicated region fallthrough
CT: control target
= control target key end

     0   :  { %12 = vsyncpa [#allocation3], 0  ;;  %s1842_s0 = inlined_call_operand.hbm [shape: bf16[16,1024], index: 0, kind: input, shape index: {}]   ;;  %s1843_s1 = inlined_call_operand.hbm [shape: bf16[1024,128], index: 1, kind: input, shape index: {}]   ;;  %s1844_s2 = inlined_call_operand.vmem [shape: f32[1,128], index: 2, kind: input, shape index: {}]   ;;  %s1845_s3 = inlined_call_operand.hbm [shape: bf16[2,128,128], index: 3, kind: input, shape index: {}]   ;;  %s1846_s4 = inlined_call_operand.vmem [shape: f32[2,1,128], index: 4, kind: input, shape index: {}]   ;;  %s1847_s5 = inlined_call_operand.hbm [shape: bf16[128,128], index: 5, kind: input, shape index: {}]   ;;  %s1848_s6 = inlined_call_operand.vmem [shape: f32[1,128], index: 6, kind: input, shape index: {}]   ;;  %s1849_s7 = inlined_call_operand.hbm [shape: f32[16,128], index: 7, kind: output, shape index: {}]  }
   0x1   :  { %13 = vsyncpa [#allocation6], 0 }
   0x2   :  { %14 = vsyncpa [#allocation9], 0 }
   0x3   :  { %15 = vsyncpa [#allocation4], 0  ;;  %s1671_s24 = smov [#allocation5]   ;;  %s1553_s28 = scalar_lea.hbm %s1843_s1, 8192 }
   0x4   :  { %s33_s25 = sshll.u32 %s1671_s24, 4  ;;  %p1554_p0 = scmp.ne.s32.totalorder %s1843_s1, %s1553_s28  ;;  %s34_s25 = int_to_ptr.vmem [resolvable:$true] %s33_s25 }
   0x5   :  { %p1557_p1 = scmp.lt.u32.totalorder %s1553_s28, %s1843_s1 }
   0x7   :  { %p1559_p2 = pnand %p1557_p1, %p1554_p0 }
   0x9   :  { %1562 = shalt.err (!%p1559_p2)
}
   0xa   :  { %s1563_s10 = scalar_lea.vmem %s34_s25, 8192  ;;  %p1568_p4 = scmp.lt.s32.totalorder %s34_s25, %s34_s25 }
   0xb   :  { %p1564_p3 = scmp.ne.s32.totalorder %s34_s25, %s1563_s10  ;;  %p1569_p5 = scmp.lt.s32.totalorder %s1563_s10, %s1563_s10 }
   0xd   :  { %p1570_p6 = por %p1569_p5, %p1568_p4 }
   0xf   :  { %p1571_p7 = pnand %p1570_p6, %p1564_p3 }
  0x11   :  { %1574 = shalt.err (!%p1571_p7)
}
  0x12   :  { %s1672_s11 = smov 64   ;;  %s1673_s12 = smov 4  }
  0x13   :  { %39 = dma.hbm_to_vmem [thread:$0]  %s1843_s1, 8192, %s34_s25, [#allocation6], %s1672_s11, %s1672_s11, %s1673_s12  }
  0x14   :  { %s1674_s15 = smov [#allocation2]   ;;  %s1575_s19 = scalar_lea.hbm %s1842_s0, 1024 }
  0x15   :  { %s21_s16 = sshll.u32 %s1674_s15, 4  ;;  %p1576_p8 = scmp.ne.s32.totalorder %s1842_s0, %s1575_s19  ;;  %s22_s16 = int_to_ptr.vmem [resolvable:$true] %s21_s16 }
  0x16   :  { %p1579_p9 = scmp.lt.u32.totalorder %s1575_s19, %s1842_s0 }
  0x18   :  { %p1581_p10 = pnand %p1579_p9, %p1576_p8 }
  0x1a   :  { %1584 = shalt.err (!%p1581_p10)
}
  0x1b   :  { %s1585_s24 = scalar_lea.vmem %s22_s16, 1024  ;;  %p1590_p12 = scmp.lt.s32.totalorder %s22_s16, %s22_s16 }
  0x1c   :  { %p1586_p11 = scmp.ne.s32.totalorder %s22_s16, %s1585_s24  ;;  %p1591_p13 = scmp.lt.s32.totalorder %s1585_s24, %s1585_s24 }
  0x1e   :  { %p1592_p0 = por %p1591_p13, %p1590_p12 }
  0x20   :  { %p1593_p1 = pnand %p1592_p0, %p1586_p11 }
  0x22   :  { %1596 = shalt.err (!%p1593_p1)
}
  0x23   :  { %s1675_s1 = smov 512   ;;  %s1676_s25 = smov 32  }
  0x24   :  { %27 = dma.hbm_to_vmem [thread:$0]  %s1842_s0, 1024, %s22_s16, [#allocation3], %s1675_s1, %s1675_s1, %s1676_s25  }
  0x25   :  { %s1677_s28 = smov [#allocation7]   ;;  %s1678_s30 = smov [#allocation8]  }
  0x26   :  { %s47_s29 = sshll.u32 %s1677_s28, 4  ;;  %s61_s8 = sshll.u32 %s1678_s30, 4  ;;  %s48_s29 = int_to_ptr.vmem [resolvable:$true] %s47_s29  ;;  %s1751_s8 = int_to_ptr.vmem [resolvable:$true] %s61_s8 }
  0x27   :  { %s1597_s13 = scalar_lea.hbm %s1845_s3, 2048 }
  0x28   :  { %p1598_p2 = scmp.ne.s32.totalorder %s1845_s3, %s1597_s13  ;;  %p1601_p3 = scmp.lt.u32.totalorder %s1597_s13, %s1845_s3 }
  0x2a   :  { %p1603_p4 = pnand %p1601_p3, %p1598_p2 }
  0x2c   :  { %1606 = shalt.err (!%p1603_p4)
}
  0x2d   :  { %s1607_s0 = scalar_lea.vmem %s48_s29, 2048  ;;  %p1612_p6 = scmp.lt.s32.totalorder %s48_s29, %s48_s29 }
  0x2e   :  { %p1608_p5 = scmp.ne.s32.totalorder %s48_s29, %s1607_s0  ;;  %p1613_p7 = scmp.lt.s32.totalorder %s1607_s0, %s1607_s0 }
  0x30   :  { %p1614_p8 = por %p1613_p7, %p1612_p6 }
  0x32   :  { %p1615_p9 = pnand %p1614_p8, %p1608_p5 }
  0x34   :  { %1618 = shalt.err (!%p1615_p9)
}
  0x35   :  { %53 = dma.hbm_to_vmem [thread:$0]  %s1845_s3, 2048, %s48_s29, [#allocation6], %s1672_s11, %s1672_s11, %s1673_s12  }
  0x36   :  { %s1619_s22 = scalar_lea.hbm %s1847_s5, 1024 }
  0x37   :  { %p1620_p10 = scmp.ne.s32.totalorder %s1847_s5, %s1619_s22  ;;  %p1623_p11 = scmp.lt.u32.totalorder %s1619_s22, %s1847_s5 }
  0x39   :  { %p1625_p12 = pnand %p1623_p11, %p1620_p10 }
  0x3b   :  { %1628 = shalt.err (!%p1625_p12)
}
  0x3c   :  { %s1629_s26 = scalar_lea.vmem %s1751_s8, 1024  ;;  %p1634_p0 = scmp.lt.s32.totalorder %s1751_s8, %s1751_s8 }
  0x3d   :  { %p1630_p13 = scmp.ne.s32.totalorder %s1751_s8, %s1629_s26  ;;  %p1635_p1 = scmp.lt.s32.totalorder %s1629_s26, %s1629_s26 }
  0x3f   :  { %p1636_p2 = por %p1635_p1, %p1634_p0 }
  0x41   :  { %p1637_p3 = pnand %p1636_p2, %p1630_p13 }
  0x43   :  { %1640 = shalt.err (!%p1637_p3)
}
  0x44   :  { %67 = dma.hbm_to_vmem [thread:$0]  %s1847_s5, 1024, %s1751_s8, [#allocation9], %s1672_s11, %s1672_s11, %s1673_s12  }
  0x45   :  { %1663 = dma.done.wait [#allocation3], 1024  }
  0x46   :  { %1664 = vsyncadd [#allocation3], 4294966272 }
  0x47   :  { %1665 = dma.done.wait [#allocation6], 10240  }
  0x48   :  { %1666 = vsyncadd [#allocation6], 4294957056 }
  0x49   :  { %1667 = dma.done.wait [#allocation9], 1024  }
  0x4a   :  { %1668 = vsyncadd [#allocation9], 4294966272  ;;  %v1465_v0 = vld [vmem:[#allocation5 + $0x40] sm:$0xff]   ;;  %v1469_v4 = vld [vmem:[#allocation5 + $0x48] sm:$0xff]   ;;  %vm1680_vm0 = vmmov 0   ;;  %s1681_s9 = smov [#allocation10]  }
  0x4b   :  { %v1466_v1 = vld [vmem:[#allocation5 + $0xc0] sm:$0xff]   ;;  %1277 = vmatprep.subr.bf16.mxu0 %v1465_v0  ;;  %v1470_v5 = vld [vmem:[#allocation5 + $0xc8] sm:$0xff]   ;;  %v1473_v8 = vld [vmem:[#allocation5 + $0x50] sm:$0xff]   ;;  %s1162_s10 = sshll.u32 %s1681_s9, 4  ;;  %s1163_s10 = int_to_ptr.vmem [resolvable:$true] %s1162_s10 }
  0x4c   :  { %v1467_v2 = vld [vmem:[#allocation5] sm:$0xff]   ;;  %1299 = vmatprep.subr.bf16.mxu1 %v1466_v1  ;;  %v1471_v6 = vld [vmem:[#allocation5 + $0x8] sm:$0xff]   ;;  %v1474_v9 = vld [vmem:[#allocation5 + $0xd0] sm:$0xff]   ;;  %p1646_p5 = scmp.lt.s32.totalorder %s1163_s10, %s1163_s10 }
  0x4d   :  { %v1468_v3 = vld [vmem:[#allocation5 + $0x80] sm:$0xff]   ;;  %1278 = vmatpush3.bf16.msra.mxu0 %v1467_v2  ;;  %v1472_v7 = vld [vmem:[#allocation5 + $0x88] sm:$0xff]   ;;  %v1475_v10 = vld [vmem:[#allocation5 + $0x10] sm:$0xff]  }
  0x4e   :  { %1300 = vmatpush3.bf16.msra.mxu1 %v1468_v3  ;;  %1279 = vmatprep.subr.bf16.mxu0 %v1469_v4  ;;  %v1476_v11 = vld [vmem:[#allocation5 + $0x90] sm:$0xff]   ;;  %v1477_v12 = vld [vmem:[#allocation5 + $0x58] sm:$0xff]   ;;  %v1481_v16 = vld [vmem:[#allocation5 + $0x60] sm:$0xff]  }
  0x4f   :  { %1301 = vmatprep.subr.bf16.mxu1 %v1470_v5  ;;  %v1478_v13 = vld [vmem:[#allocation5 + $0xd8] sm:$0xff]   ;;  %v1482_v17 = vld [vmem:[#allocation5 + $0xe0] sm:$0xff]   ;;  %v1485_v20 = vld [vmem:[#allocation5 + $0x68] sm:$0xff]  }
  0x50   :  { %v1479_v14 = vld [vmem:[#allocation5 + $0x18] sm:$0xff]   ;;  %v1483_v18 = vld [vmem:[#allocation5 + $0x20] sm:$0xff]   ;;  %v1486_v21 = vld [vmem:[#allocation5 + $0xe8] sm:$0xff]  }
  0x51   :  { %1280 = vmatpush3.bf16.msra.mxu0 %v1471_v6  ;;  %v1480_v15 = vld [vmem:[#allocation5 + $0x98] sm:$0xff]   ;;  %v1484_v19 = vld [vmem:[#allocation5 + $0xa0] sm:$0xff]   ;;  %v1487_v22 = vld [vmem:[#allocation5 + $0x28] sm:$0xff]  }
  0x52   :  { %1302 = vmatpush3.bf16.msra.mxu1 %v1472_v7  ;;  %1281 = vmatprep.subr.bf16.mxu0 %v1473_v8  ;;  %v1488_v23 = vld [vmem:[#allocation5 + $0xa8] sm:$0xff]   ;;  %v1489_v24 = vld [vmem:[#allocation5 + $0x70] sm:$0xff]   ;;  %v1493_v28 = vld [vmem:[#allocation5 + $0x78] sm:$0xff]  }
  0x53   :  { %1303 = vmatprep.subr.bf16.mxu1 %v1474_v9  ;;  %v1490_v25 = vld [vmem:[#allocation5 + $0xf0] sm:$0xff]   ;;  %v1494_v29 = vld [vmem:[#allocation5 + $0xf8] sm:$0xff]   ;;  %v83_v32 = vld [vmem:[#allocation2] sm:$0xff] }
  0x54   :  { %v1491_v26 = vld [vmem:[#allocation5 + $0x30] sm:$0xff]   ;;  %v1495_v30 = vld [vmem:[#allocation5 + $0x38] sm:$0xff]   ;;  %v87_v33 = vld [vmem:[#allocation2 + $0x20] sm:$0xff] }
  0x55   :  { %1282 = vmatpush3.bf16.msra.mxu0 %v1475_v10  ;;  %v1492_v27 = vld [vmem:[#allocation5 + $0xb0] sm:$0xff]   ;;  %v1496_v31 = vld [vmem:[#allocation5 + $0xb8] sm:$0xff]   ;;  %v84_v34 = vld [vmem:[#allocation2 + $0x8] sm:$0xff]  ;;  %v1177_v35 = vcombine.low %v83_v32, %v87_v33  ;;  %v1178_v36 = vcombine.high %v83_v32, %v87_v33 }
  0x56   :  { %1304 = vmatpush3.bf16.msra.mxu1 %v1476_v11  ;;  %1283 = vmatprep.subr.bf16.mxu0 %v1477_v12  ;;  %v88_v37 = vld [vmem:[#allocation2 + $0x28] sm:$0xff]  ;;  %v1497_v40 = vld [vmem:[#allocation5 + $0x140] sm:$0xff]   ;;  %v1505_v48 = vld [vmem:[#allocation5 + $0x150] sm:$0xff]  }
  0x57   :  { %1305 = vmatprep.subr.bf16.mxu1 %v1478_v13  ;;  %v1179_v38 = vcombine.low %v84_v34, %v88_v37  ;;  %v1180_v39 = vcombine.high %v84_v34, %v88_v37  ;;  %682 = vmatprep.mubr.bf16.mxu0 %v1178_v36  ;;  %v1498_v41 = vld [vmem:[#allocation5 + $0x1c0] sm:$0xff]   ;;  %v1501_v44 = vld [vmem:[#allocation5 + $0x148] sm:$0xff]   ;;  %v1506_v49 = vld [vmem:[#allocation5 + $0x1d0] sm:$0xff]  }
  0x58   :  { %v1499_v42 = vld [vmem:[#allocation5 + $0x100] sm:$0xff]   ;;  %v1502_v45 = vld [vmem:[#allocation5 + $0x1c8] sm:$0xff]   ;;  %v1507_v50 = vld [vmem:[#allocation5 + $0x110] sm:$0xff]  }
  0x59   :  { %1284 = vmatpush3.bf16.msra.mxu0 %v1479_v14  ;;  %723 = vmatprep.mubr.bf16.mxu1 %v1180_v39  ;;  %v1500_v43 = vld [vmem:[#allocation5 + $0x180] sm:$0xff]   ;;  %v1503_v46 = vld [vmem:[#allocation5 + $0x108] sm:$0xff]   ;;  %v1508_v51 = vld [vmem:[#allocation5 + $0x190] sm:$0xff]  }
  0x5a   :  { %1306 = vmatpush3.bf16.msra.mxu1 %v1480_v15  ;;  %1285 = vmatprep.subr.bf16.mxu0 %v1481_v16  ;;  %v1504_v47 = vld [vmem:[#allocation5 + $0x188] sm:$0xff]   ;;  %v1509_v52 = vld [vmem:[#allocation5 + $0x158] sm:$0xff]   ;;  %v1513_v56 = vld [vmem:[#allocation5 + $0x160] sm:$0xff]  }
  0x5b   :  { %1307 = vmatprep.subr.bf16.mxu1 %v1482_v17  ;;  %v1510_v53 = vld [vmem:[#allocation5 + $0x1d8] sm:$0xff]   ;;  %v1514_v57 = vld [vmem:[#allocation5 + $0x1e0] sm:$0xff]   ;;  %v1517_v60 = vld [vmem:[#allocation5 + $0x168] sm:$0xff]   ;;  %v1679_v17 = vmov 0.0  }
  0x5c   :  { %v1511_v54 = vld [vmem:[#allocation5 + $0x118] sm:$0xff]   ;;  %v1515_v58 = vld [vmem:[#allocation5 + $0x120] sm:$0xff]   ;;  %v1518_v61 = vld [vmem:[#allocation5 + $0x1e8] sm:$0xff]  }
  0x5d   :  { %1286 = vmatpush3.bf16.msra.mxu0 %v1483_v18  ;;  %v1512_v55 = vld [vmem:[#allocation5 + $0x198] sm:$0xff]   ;;  %v1516_v59 = vld [vmem:[#allocation5 + $0x1a0] sm:$0xff]   ;;  %v1519_v62 = vld [vmem:[#allocation5 + $0x128] sm:$0xff]  }
  0x5e   :  { %1308 = vmatpush3.bf16.msra.mxu1 %v1484_v19  ;;  %1287 = vmatprep.subr.bf16.mxu0 %v1485_v20  ;;  %v1520_v63 = vld [vmem:[#allocation5 + $0x1a8] sm:$0xff]   ;;  %v1521_v0 = vld [vmem:[#allocation5 + $0x170] sm:$0xff]   ;;  %v1525_v4 = vld [vmem:[#allocation5 + $0x178] sm:$0xff]  }
  0x5f   :  { %1309 = vmatprep.subr.bf16.mxu1 %v1486_v21  ;;  %v1522_v1 = vld [vmem:[#allocation5 + $0x1f0] sm:$0xff]   ;;  %v1526_v5 = vld [vmem:[#allocation5 + $0x1f8] sm:$0xff]   ;;  %v1529_v16 = vld [vmem:[#allocation7] sm:$0xff]  }
  0x60   :  { %v1523_v2 = vld [vmem:[#allocation5 + $0x130] sm:$0xff]   ;;  %v1527_v6 = vld [vmem:[#allocation5 + $0x138] sm:$0xff]   ;;  %v1530_v18 = vld [vmem:[#allocation7 + $0x8] sm:$0xff]  }
  0x61   :  { %1288 = vmatpush3.bf16.msra.mxu0 %v1487_v22  ;;  %v1524_v3 = vld [vmem:[#allocation5 + $0x1b0] sm:$0xff]   ;;  %v1528_v7 = vld [vmem:[#allocation5 + $0x1b8] sm:$0xff]   ;;  %v1533_v21 = vld [vmem:[#allocation7 + $0x20] sm:$0xff]  }
  0x62   :  { %1310 = vmatpush3.bf16.msra.mxu1 %v1488_v23  ;;  %1289 = vmatprep.subr.bf16.mxu0 %v1489_v24  ;;  %v85_v8 = vld [vmem:[#allocation2 + $0x10] sm:$0xff]  ;;  %v86_v12 = vld [vmem:[#allocation2 + $0x18] sm:$0xff]  ;;  %v1534_v22 = vld [vmem:[#allocation7 + $0x28] sm:$0xff]  }
  0x63   :  { %1311 = vmatprep.subr.bf16.mxu1 %v1490_v25  ;;  %v89_v9 = vld [vmem:[#allocation2 + $0x30] sm:$0xff]  ;;  %v90_v13 = vld [vmem:[#allocation2 + $0x38] sm:$0xff]  ;;  %v1537_v25 = vld [vmem:[#allocation7 + $0x40] sm:$0xff]  }
  0x64   :  { %v1181_v10 = vcombine.low %v85_v8, %v89_v9  ;;  %v1182_v11 = vcombine.high %v85_v8, %v89_v9  ;;  %v1183_v14 = vcombine.low %v86_v12, %v90_v13  ;;  %v1184_v15 = vcombine.high %v86_v12, %v90_v13  ;;  %v1531_v19 = vld [vmem:[#allocation7 + $0x10] sm:$0xff]   ;;  %v1532_v20 = vld [vmem:[#allocation7 + $0x18] sm:$0xff]   ;;  %v1176_v33 = vld [vmem:[%s1844_s2] ss:$0 sm:$0xff] }
  0x65   :  { %1290 = vmatpush3.bf16.msra.mxu0 %v1491_v26  ;;  %v1535_v23 = vld [vmem:[#allocation7 + $0x30] sm:$0xff]   ;;  %v1536_v24 = vld [vmem:[#allocation7 + $0x38] sm:$0xff]   ;;  %v1538_v26 = vld [vmem:[#allocation7 + $0x48] sm:$0xff]  }
  0x66   :  { %1312 = vmatpush3.bf16.msra.mxu1 %v1492_v27  ;;  %1291 = vmatprep.subr.bf16.mxu0 %v1493_v28  ;;  %v1539_v27 = vld [vmem:[#allocation7 + $0x50] sm:$0xff]   ;;  %v1540_v28 = vld [vmem:[#allocation7 + $0x58] sm:$0xff]   ;;  %v1550_v8 = vld [vmem:[#allocation8 + $0x28] sm:$0xff]  }
  0x67   :  { %1313 = vmatprep.subr.bf16.mxu1 %v1494_v29  ;;  %v1541_v29 = vld [vmem:[#allocation7 + $0x60] sm:$0xff]  }
  0x68   :  { %v1249_v9 = vld [vmem:[%s1846_s4] ss:$0 sm:$0xff] }
  0x69   :  { %1292 = vmatpush3.bf16.msra.mxu0 %v1495_v30  ;;  %v1542_v30 = vld [vmem:[#allocation7 + $0x68] sm:$0xff]  }
  0x6a   :  { %1314 = vmatpush3.bf16.msra.mxu1 %v1496_v31  ;;  %1321 = vmatprep.subr.bf16.mxu0 %v1497_v40 }
  0x6b   :  { %1343 = vmatprep.subr.bf16.mxu1 %v1498_v41 }
  0x6c   :  { %683 = vmatmul.mubr.bf16.vlgmr.msra.gmra.mrb[0].mxu0 %v1177_v35 }
  0x6d   :  { %724 = vmatmul.mubr.bf16.vlgmr.msra.gmra.mrb[0].mxu1 %v1179_v38  ;;  %1322 = vmatpush3.bf16.msra.mxu0 %v1499_v42 }
  0x6e   :  { %1344 = vmatpush3.bf16.msra.mxu1 %v1500_v43  ;;  %1323 = vmatprep.subr.bf16.mxu0 %v1501_v44 }
  0x6f   :  { %1345 = vmatprep.subr.bf16.mxu1 %v1502_v45  ;;  %764 = vmatprep.mubr.bf16.mxu0 %v1182_v11 }
  0x70   :  { %805 = vmatprep.mubr.bf16.mxu1 %v1184_v15 }
  0x71   :  { %1324 = vmatpush3.bf16.msra.mxu0 %v1503_v46 }
  0x72   :  { %1346 = vmatpush3.bf16.msra.mxu1 %v1504_v47  ;;  %1325 = vmatprep.subr.bf16.mxu0 %v1505_v48 }
  0x73   :  { %1347 = vmatprep.subr.bf16.mxu1 %v1506_v49 }
  0x75   :  { %1326 = vmatpush3.bf16.msra.mxu0 %v1507_v50 }
  0x76   :  { %1348 = vmatpush3.bf16.msra.mxu1 %v1508_v51  ;;  %1327 = vmatprep.subr.bf16.mxu0 %v1509_v52 }
  0x77   :  { %1349 = vmatprep.subr.bf16.mxu1 %v1510_v53 }
  0x79   :  { %1328 = vmatpush3.bf16.msra.mxu0 %v1511_v54 }
  0x7a   :  { %1350 = vmatpush3.bf16.msra.mxu1 %v1512_v55  ;;  %1329 = vmatprep.subr.bf16.mxu0 %v1513_v56 }
  0x7b   :  { %1351 = vmatprep.subr.bf16.mxu1 %v1514_v57 }
  0x7d   :  { %1330 = vmatpush3.bf16.msra.mxu0 %v1515_v58 }
  0x7e   :  { %1352 = vmatpush3.bf16.msra.mxu1 %v1516_v59  ;;  %1331 = vmatprep.subr.bf16.mxu0 %v1517_v60 }
  0x7f   :  { %1353 = vmatprep.subr.bf16.mxu1 %v1518_v61 }
  0x81   :  { %1332 = vmatpush3.bf16.msra.mxu0 %v1519_v62 }
  0x82   :  { %1354 = vmatpush3.bf16.msra.mxu1 %v1520_v63  ;;  %1333 = vmatprep.subr.bf16.mxu0 %v1521_v0 }
  0x83   :  { %1355 = vmatprep.subr.bf16.mxu1 %v1522_v1  ;;  %v1543_v1 = vld [vmem:[#allocation7 + $0x70] sm:$0xff]  }
  0x85   :  { %1334 = vmatpush3.bf16.msra.mxu0 %v1523_v2  ;;  %v1544_v2 = vld [vmem:[#allocation7 + $0x78] sm:$0xff]  }
  0x86   :  { %1356 = vmatpush3.bf16.msra.mxu1 %v1524_v3  ;;  %1335 = vmatprep.subr.bf16.mxu0 %v1525_v4  ;;  %v1545_v3 = vld [vmem:[#allocation8] sm:$0xff]   ;;  %v1546_v4 = vld [vmem:[#allocation8 + $0x8] sm:$0xff]  }
  0x87   :  { %1357 = vmatprep.subr.bf16.mxu1 %v1526_v5  ;;  %v1547_v5 = vld [vmem:[#allocation8 + $0x10] sm:$0xff]  }
  0x89   :  { %1336 = vmatpush3.bf16.msra.mxu0 %v1527_v6  ;;  %v1548_v6 = vld [vmem:[#allocation8 + $0x18] sm:$0xff]  }
  0x8a   :  { %1358 = vmatpush3.bf16.msra.mxu1 %v1528_v7  ;;  %1392 = vmatprep.subr.bf16.mxu0 %v1679_v17  ;;  %v1549_v7 = vld [vmem:[#allocation8 + $0x20] sm:$0xff]  }
  0x8b   :  { %1412 = vmatprep.subr.bf16.mxu1 %v1679_v17 }
  0x8c   :  { %765 = vmatmul.mubr.bf16.vlgmr.msra.gmra.mrb[4].mxu0 %v1181_v10 }
  0x8d   :  { %806 = vmatmul.mubr.bf16.vlgmr.msra.gmra.mrb[4].mxu1 %v1183_v14  ;;  %1393 = vmatpush3.bf16.msra.mxu0 %v1529_v16 }
  0x8e   :  { %1394 = vmatprep.subr.bf16.mxu0 %v1679_v17  ;;  %1408 = vmatprep.mubr.msk.bf16.mxu0 %vm1680_vm0, %v1679_v17 }
  0x8f   :  { %1428 = vmatprep.mubr.msk.bf16.mxu1 %vm1680_vm0, %v1679_v17  ;;  %1413 = vmatpush3.bf16.msra.mxu1 %v1537_v25 }
  0x90   :  { %1414 = vmatprep.subr.bf16.mxu1 %v1679_v17 }
  0x91   :  { %1395 = vmatpush3.bf16.msra.mxu0 %v1530_v18  ;;  %v1551_v18 = vld [vmem:[#allocation8 + $0x30] sm:$0xff]  }
  0x92   :  { %1396 = vmatprep.subr.bf16.mxu0 %v1679_v17 }
  0x93   :  { %1415 = vmatpush3.bf16.msra.mxu1 %v1538_v26 }
  0x94   :  { %1416 = vmatprep.subr.bf16.mxu1 %v1679_v17 }
  0x95   :  { %1397 = vmatpush3.bf16.msra.mxu0 %v1531_v19  ;;  %v1552_v19 = vld [vmem:[#allocation8 + $0x38] sm:$0xff]  }
  0x96   :  { %1398 = vmatprep.subr.bf16.mxu0 %v1679_v17 }
  0x97   :  { %1417 = vmatpush3.bf16.msra.mxu1 %v1539_v27 }
  0x98   :  { %1418 = vmatprep.subr.bf16.mxu1 %v1679_v17 }
  0x99   :  { %1399 = vmatpush3.bf16.msra.mxu0 %v1532_v20  ;;  %v1259_v20 = vld [vmem:[%s1846_s4 + $0x1] ss:$0 sm:$0xff]  ;;  %s1641_s4 = scalar_lea.vmem %s1163_s10, 256 }
  0x9a   :  { %1400 = vmatprep.subr.bf16.mxu0 %v1679_v17  ;;  %p1642_p4 = scmp.ne.s32.totalorder %s1163_s10, %s1641_s4  ;;  %p1647_p6 = scmp.lt.s32.totalorder %s1641_s4, %s1641_s4 }
  0x9b   :  { %1419 = vmatpush3.bf16.msra.mxu1 %v1540_v28  ;;  %v1268_v28 = vld [vmem:[%s1848_s6] ss:$0 sm:$0xff] }
  0x9c   :  { %1420 = vmatprep.subr.bf16.mxu1 %v1679_v17  ;;  %p1648_p7 = por %p1647_p6, %p1646_p5 }
  0x9d   :  { %1401 = vmatpush3.bf16.msra.mxu0 %v1533_v21 }
  0x9e   :  { %1402 = vmatprep.subr.bf16.mxu0 %v1679_v17  ;;  %p1649_p8 = pnand %p1648_p7, %p1642_p4 }
  0x9f   :  { %1421 = vmatpush3.bf16.msra.mxu1 %v1541_v29 }
  0xa0   :  { %1422 = vmatprep.subr.bf16.mxu1 %v1679_v17 }
  0xa1   :  { %1403 = vmatpush3.bf16.msra.mxu0 %v1534_v22 }
  0xa2   :  { %1404 = vmatprep.subr.bf16.mxu0 %v1679_v17 }
  0xa3   :  { %1423 = vmatpush3.bf16.msra.mxu1 %v1542_v30 }
  0xa4   :  { %1424 = vmatprep.subr.bf16.mxu1 %v1679_v17 }
  0xa5   :  { %1405 = vmatpush3.bf16.msra.mxu0 %v1535_v23 }
  0xa6   :  { %1406 = vmatprep.subr.bf16.mxu0 %v1679_v17 }
  0xa7   :  { %1425 = vmatpush3.bf16.msra.mxu1 %v1543_v1 }
  0xa8   :  { %1426 = vmatprep.subr.bf16.mxu1 %v1679_v17 }
  0xa9   :  { %1407 = vmatpush3.bf16.msra.mxu0 %v1536_v24 }
  0xaa   :  { %1432 = vmatprep.subr.bf16.mxu0 %v1679_v17 }
  0xab   :  { %1427 = vmatpush3.bf16.msra.mxu1 %v1544_v2 }
 0x13f   :  { %v1293_v31 = vpop.f32.mrb[0].mxu0 }
 0x140   :  { %v1315_v32 = vpop.f32.mrb[0].mxu1  ;;  %v1294_v34 = vpop.f32.mrb[1].mxu0 }
 0x141   :  { %v1295_v35 = vadd.f32 %v1294_v34, %v1293_v31  ;;  %v1316_v36 = vpop.f32.mrb[1].mxu1  ;;  %v1296_v37 = vpop.f32.mrb[2].mxu0 }
 0x142   :  { %v1317_v38 = vadd.f32 %v1316_v36, %v1315_v32  ;;  %v1318_v39 = vpop.f32.mrb[2].mxu1  ;;  %v1297_v40 = vpop.f32.mrb[3].mxu0 }
 0x143   :  { %v685_v41 = vadd.f32 %v1295_v35, %v1176_v33  ;;  %v1298_v42 = vadd.f32 %v1297_v40, %v1296_v37  ;;  %v1319_v43 = vpop.f32.mrb[3].mxu1 }
 0x144   :  { %v1320_v44 = vadd.f32 %v1319_v43, %v1318_v39 }
 0x145   :  { %v726_v45 = vadd.f32 %v1317_v38, %v685_v41  ;;  %v688_v46 = vadd.f32 %v1298_v42, %v1176_v33 }
 0x147   :  { %v729_v47 = vadd.f32 %v1320_v44, %v688_v46 }
 0x15f   :  { %v1337_v48 = vpop.f32.mrb[4].mxu0 }
 0x160   :  { %v1359_v49 = vpop.f32.mrb[4].mxu1  ;;  %v1338_v50 = vpop.f32.mrb[5].mxu0 }
 0x161   :  { %v1339_v51 = vadd.f32 %v1338_v50, %v1337_v48  ;;  %v1360_v52 = vpop.f32.mrb[5].mxu1  ;;  %v1340_v53 = vpop.f32.mrb[6].mxu0 }
 0x162   :  { %v1361_v54 = vadd.f32 %v1360_v52, %v1359_v49  ;;  %v1362_v55 = vpop.f32.mrb[6].mxu1  ;;  %v1341_v56 = vpop.f32.mrb[7].mxu0 }
 0x163   :  { %v767_v57 = vadd.f32 %v1339_v51, %v726_v45  ;;  %v1342_v58 = vadd.f32 %v1341_v56, %v1340_v53  ;;  %v1363_v59 = vpop.f32.mrb[7].mxu1 }
 0x164   :  { %v1364_v60 = vadd.f32 %v1363_v59, %v1362_v55 }
 0x165   :  { %v808_v61 = vadd.f32 %v1361_v54, %v767_v57  ;;  %v770_v62 = vadd.f32 %v1342_v58, %v729_v47 }
 0x167   :  { %v811_v63 = vadd.f32 %v1364_v60, %v770_v62 }
 0x169   :  { %v814_v0 = vpack.c.bf16 %v811_v63, %v808_v61 }
 0x16b   :  { %1409 = vmatmul.mubr.bf16.vlgmr.msra.gmra.mrb[8].mxu0 %v814_v0 }
 0x16c   :  { %1448 = vmatprep.mubr.msk.bf16.mxu0 %vm1680_vm0, %v1679_v17  ;;  %1433 = vmatpush3.bf16.msra.mxu0 %v1545_v3 }
 0x16d   :  { %1434 = vmatprep.subr.bf16.mxu0 %v1679_v17 }
 0x170   :  { %1435 = vmatpush3.bf16.msra.mxu0 %v1546_v4 }
 0x171   :  { %1436 = vmatprep.subr.bf16.mxu0 %v1679_v17 }
 0x174   :  { %1437 = vmatpush3.bf16.msra.mxu0 %v1547_v5 }
 0x175   :  { %1438 = vmatprep.subr.bf16.mxu0 %v1679_v17 }
 0x178   :  { %1439 = vmatpush3.bf16.msra.mxu0 %v1548_v6 }
 0x179   :  { %1440 = vmatprep.subr.bf16.mxu0 %v1679_v17 }
 0x17c   :  { %1441 = vmatpush3.bf16.msra.mxu0 %v1549_v7 }
 0x17d   :  { %1442 = vmatprep.subr.bf16.mxu0 %v1679_v17 }
 0x180   :  { %1443 = vmatpush3.bf16.msra.mxu0 %v1550_v8 }
 0x181   :  { %1444 = vmatprep.subr.bf16.mxu0 %v1679_v17 }
 0x184   :  { %1445 = vmatpush3.bf16.msra.mxu0 %v1551_v18 }
 0x185   :  { %1446 = vmatprep.subr.bf16.mxu0 %v1679_v17 }
 0x188   :  { %1447 = vmatpush3.bf16.msra.mxu0 %v1552_v19 }
 0x23e   :  { %v920_v10 = vpop.f32.mrb[8].mxu0 }
 0x23f   :  { %v1410_v11 = vpop.f32.mrb[9].mxu0  ;;  %v921_v13 = vadd.f32 %v1249_v9, %v920_v10 }
 0x240   :  { %v923_v12 = vpop.f32.mrb[10].mxu0 }
 0x241   :  { %v924_v14 = vadd.f32 %v1249_v9, %v923_v12  ;;  %v1411_v15 = vpop.f32.mrb[11].mxu0 }
 0x243   :  { %v927_v16 = vpack.c.bf16 %v924_v14, %v921_v13 }
 0x245   :  { %1429 = vmatmul.mubr.bf16.vlgmr.msra.gmra.mrb[8].mxu1 %v927_v16 }
 0x318   :  { %v1035_v21 = vpop.f32.mrb[8].mxu1 }
 0x319   :  { %v1430_v22 = vpop.f32.mrb[9].mxu1  ;;  %v1036_v24 = vadd.f32 %v1259_v20, %v1035_v21 }
 0x31a   :  { %v1038_v23 = vpop.f32.mrb[10].mxu1 }
 0x31b   :  { %v1039_v25 = vadd.f32 %v1259_v20, %v1038_v23  ;;  %v1431_v26 = vpop.f32.mrb[11].mxu1 }
 0x31d   :  { %v1042_v27 = vpack.c.bf16 %v1039_v25, %v1036_v24 }
 0x31f   :  { %1449 = vmatmul.mubr.bf16.vlgmr.msra.gmra.mrb[12].mxu0 %v1042_v27 }
 0x3f2   :  { %v1148_v29 = vpop.f32.mrb[12].mxu0 }
 0x3f3   :  { %v1149_v17 = vadd.f32 %v1268_v28, %v1148_v29  ;;  %v1450_v30 = vpop.f32.mrb[13].mxu0 }
 0x3f4   :  { %v1151_v31 = vpop.f32.mrb[14].mxu0 }
 0x3f5   :  { %1155 = vst [vmem:[#allocation10] sm:$0xff] %v1149_v17  ;;  %v1152_v32 = vadd.f32 %v1268_v28, %v1151_v31  ;;  %v1451_v33 = vpop.f32.mrb[15].mxu0 }
 0x3f7   :  { %1156 = vst [vmem:[#allocation10 + $0x8] sm:$0xff] %v1152_v32 }
 0x3f8   :  { %1652 = shalt.err (!%p1649_p8)
}
 0x3f9   :  { %s1653_s14 = scalar_lea.hbm %s1849_s7, 256 }
 0x3fa   :  { %p1654_p9 = scmp.ne.s32.totalorder %s1849_s7, %s1653_s14  ;;  %p1657_p10 = scmp.lt.u32.totalorder %s1653_s14, %s1849_s7 }
 0x3fc   :  { %p1659_p11 = pnand %p1657_p10, %p1654_p9 }
 0x3fe   :  { %1662 = shalt.err (!%p1659_p11)
}
 0x3ff   :  { %s1682_s16 = smov 128   ;;  %s1683_s19 = smov 8  }
 0x400   :  { %1168 = dma.vmem_to_hbm [thread:$0]  %s1163_s10, 256, %s1849_s7, [#allocation4], %s1682_s16, %s1682_s16, %s1683_s19  }
 0x401   :  { %1669 = dma.done.wait [#allocation4], 256  }
 0x402   :  { %1670 = vsyncadd [#allocation4], 4294967040 }
 0x403   :  { %1172 = vsyncpa [#allocation3], 1 }
 0x404   :  { %1173 = vsyncpa [#allocation6], 1 }
 0x405   :  { %1174 = vsyncpa [#allocation9], 1 }
 0x406   :  { %1175 = vsyncpa [#allocation4], 1 }

</bundles_post_ra>
